<compile_context>
chip_gen: v7x
topology: tpu7x:2x2x1
jax: 0.10.0
libtpu: 0.0.40
codegen_flags: <defaults>
</compile_context>

<pallas_src>
import jax
import jax.numpy as jnp
from jax.experimental import pallas as pl
from jax.experimental.pallas import tpu as pltpu

MARGIN = 0.5
EPS = 1e-6  # PyTorch pairwise_distance eps, added elementwise before the norm

_HEADROOM_BYTES = 16 * 1024 * 1024   # intermediates / upcast temporaries headroom
_MAX_BLOCK_N = 2048                  # HBM roofline flattens past ~512-1024 rows/tile


def _vmem_budgets():
    """(input_budget_bytes, vmem_limit_bytes), generation-aware."""
    cap = 64 * 1024 * 1024  # conservative default = v7x physical VMEM per core
    try:
        info = pltpu.get_tpu_info()
        cap = int(getattr(info, "vmem_capacity_bytes", cap)) or cap
    except Exception:
        pass
    vmem_limit = (3 * cap) // 4                       # 48 MiB v7x, 96 MiB v5e/v6e
    input_budget = max(8 * 1024 * 1024, vmem_limit - _HEADROOM_BYTES)
    return input_budget, vmem_limit


def _pick_block_n(n, d, dtype, input_budget):
    """Largest row tile whose double-buffered 3-input footprint fits the budget."""
    itemsize = jnp.dtype(dtype).itemsize
    d_pad = -(-d // 128) * 128                        # lane padding to 128
    sublane = max(8, 32 // max(itemsize, 1))          # 8 f32, 16 bf16, 32 int8
    per_row = 3 * 2 * d_pad * itemsize                # 3 inputs x 2 pipeline buffers
    if itemsize < 4:
        per_row += 3 * d_pad * 4                      # f32 upcast temporaries per live tile
    bn = (input_budget // per_row) // sublane * sublane
    bn = max(sublane, min(bn, _MAX_BLOCK_N))
    if bn >= n:
        return n                                      # single full-extent block (any N allowed)
    return bn


def _triplet_kernel(n_valid_ref, a_ref, p_ref, neg_ref, o_ref):
    i = pl.program_id(0)

    a = a_ref[...]
    p = p_ref[...]
    ng = neg_ref[...]
    if a.dtype != jnp.float32:  # upcast once; accumulation stays f32
        a = a.astype(jnp.float32)
        p = p.astype(jnp.float32)
        ng = ng.astype(jnp.float32)

    block_n = a.shape[0]

    # d(x, y) = || x - y + eps ||_2 along the feature (lane) axis; keep (rows, 1) shapes
    # so the cross-lane reduce is a single XLU pass with no 1-D relayouts.
    dp_sq = jnp.sum(jnp.square(a - p + EPS), axis=-1, keepdims=True)    # (block_n, 1)
    dn_sq = jnp.sum(jnp.square(a - ng + EPS), axis=-1, keepdims=True)   # (block_n, 1)
    per_sample = jnp.maximum(jnp.sqrt(dp_sq) - jnp.sqrt(dn_sq) + MARGIN, 0.0)

    # Mask rows beyond the true batch size (ragged trailing block). Must stay a select
    # (jnp.where), never a multiply, so NaN/garbage in the OOB tail cannot propagate.
    row = jax.lax.broadcasted_iota(jnp.int32, per_sample.shape, 0) + i * block_n
    per_sample = jnp.where(row < n_valid_ref[0], per_sample, 0.0)

    # Per-block partial hinge sum; batch axis is "parallel" (no shared accumulator).
    o_ref[...] = jnp.sum(per_sample, axis=0, keepdims=True)


def triplet_loss(anchor, positive, negative, *, block_n=None):
    """anchor/positive/negative: (N, D) arrays. Returns scalar f32 loss."""
    assert anchor.shape == positive.shape == negative.shape
    n, d = anchor.shape

    input_budget, vmem_limit = _vmem_budgets()
    if block_n is None:
        block_n = _pick_block_n(n, d, anchor.dtype, input_budget)
    else:
        block_n = int(block_n)
        if block_n < n:
            block_n = max(8, block_n // 8 * 8)   # sublane-aligned unless full extent
        else:
            block_n = n

    num_blocks = pl.cdiv(n, block_n)
    n_valid = jnp.array([n], dtype=jnp.int32)

    partials = pl.pallas_call(
        _triplet_kernel,
        out_shape=jax.ShapeDtypeStruct((num_blocks, 1), jnp.float32),
        grid_spec=pltpu.PrefetchScalarGridSpec(
            num_scalar_prefetch=1,
            grid=(num_blocks,),
            in_specs=[
                pl.BlockSpec((block_n, d), lambda i, nref: (i, 0)),
                pl.BlockSpec((block_n, d), lambda i, nref: (i, 0)),
                pl.BlockSpec((block_n, d), lambda i, nref: (i, 0)),
            ],
            out_specs=pl.BlockSpec((1, 1), lambda i, nref: (i, 0)),
        ),
        compiler_params=pltpu.CompilerParams(
            dimension_semantics=("parallel",),   # independent blocks -> megacore on v7x
            vmem_limit_bytes=vmem_limit,
        ),
    )(n_valid, anchor, positive, negative)

    return jnp.sum(partials) / n   # mean over the *true* batch size


def _triplet_loss_ref(anchor, positive, negative):
    anchor = anchor.astype(jnp.float32)
    positive = positive.astype(jnp.float32)
    negative = negative.astype(jnp.float32)
    d_ap = jnp.sqrt(jnp.sum(jnp.square(anchor - positive + EPS), axis=-1))
    d_an = jnp.sqrt(jnp.sum(jnp.square(anchor - negative + EPS), axis=-1))
    return jnp.mean(jnp.maximum(d_ap - d_an + MARGIN, 0.0))


if __name__ == "__main__":
    key = jax.random.PRNGKey(0)

    # Case 1: small aligned batch (matches the toy spec shapes).
    k_a, k_p, k_n = jax.random.split(key, 3)
    N, D = 8, 128
    anchor = jax.random.normal(k_a, (N, D), dtype=jnp.float32)
    positive = jax.random.normal(k_p, (N, D), dtype=jnp.float32)
    negative = jax.random.normal(k_n, (N, D), dtype=jnp.float32)

    loss = triplet_loss(anchor, positive, negative)
    jax.block_until_ready(loss)
    ref = _triplet_loss_ref(anchor, positive, negative)
    assert jnp.allclose(loss, ref, atol=1e-5, rtol=1e-5), (loss, ref)

    # Case 2: non-multiple-of-8 batch with a small forced tile -> exercises multi-block
    # "parallel" partial sums, ragged trailing block and masking (no padding).
    k_a2, k_p2, k_n2 = jax.random.split(jax.random.PRNGKey(1), 3)
    N2, D2 = 20, 256
    a2 = jax.random.normal(k_a2, (N2, D2), dtype=jnp.float32)
    p2 = jax.random.normal(k_p2, (N2, D2), dtype=jnp.float32)
    n2 = jax.random.normal(k_n2, (N2, D2), dtype=jnp.float32)

    loss2 = triplet_loss(a2, p2, n2, block_n=8)
    jax.block_until_ready(loss2)
    ref2 = _triplet_loss_ref(a2, p2, n2)
    assert jnp.allclose(loss2, ref2, atol=1e-5, rtol=1e-5), (loss2, ref2)

    # Case 3: same ragged batch with auto block sizing -> single full-extent block.
    loss3 = triplet_loss(a2, p2, n2)
    jax.block_until_ready(loss3)
    assert jnp.allclose(loss3, ref2, atol=1e-5, rtol=1e-5), (loss3, ref2)

    # Case 4: bf16 embeddings -> in-kernel upcast path (f32 accumulation).
    k_a4, k_p4, k_n4 = jax.random.split(jax.random.PRNGKey(2), 3)
    N4, D4 = 16, 128
    a4 = jax.random.normal(k_a4, (N4, D4), dtype=jnp.bfloat16)
    p4 = jax.random.normal(k_p4, (N4, D4), dtype=jnp.bfloat16)
    n4 = jax.random.normal(k_n4, (N4, D4), dtype=jnp.bfloat16)

    loss4 = triplet_loss(a4, p4, n4)
    jax.block_until_ready(loss4)
    ref4 = _triplet_loss_ref(a4, p4, n4)
    assert jnp.allclose(loss4, ref4, atol=1e-3, rtol=1e-3), (loss4, ref4)

    print("KERNEL_OK")
</pallas_src>

<mosaic_0001>
module attributes {stable_mosaic.version = 11 : i64} {
  func.func @_triplet_kernel(%arg0: i32, %arg1: memref<1xi32, #tpu.memory_space<smem>>, %arg2: memref<8x128xf32, #tpu.memory_space<vmem>>, %arg3: memref<8x128xf32, #tpu.memory_space<vmem>>, %arg4: memref<8x128xf32, #tpu.memory_space<vmem>>, %arg5: memref<1x1xf32, #tpu.memory_space<vmem>>) attributes {dimension_semantics = [#tpu.dimension_semantics<parallel>], iteration_bounds = array<i64: 1>, scalar_prefetch = 1 : i64, scratch_operands = 0 : i64, tpu.core_type = #tpu.core_type<tc>, window_params = [{transform_indices = @transform_0, window_bounds = array<i64: 8, 128>}, {transform_indices = @transform_1, window_bounds = array<i64: 8, 128>}, {transform_indices = @transform_2, window_bounds = array<i64: 8, 128>}, {transform_indices = @transform_3, window_bounds = array<i64: 1, 1>}]} {
    %c0 = arith.constant 0 : index
    %c0_0 = arith.constant 0 : index
    %0 = vector.load %arg2[%c0, %c0_0] : memref<8x128xf32, #tpu.memory_space<vmem>>, vector<8x128xf32>
    %c0_1 = arith.constant 0 : index
    %c0_2 = arith.constant 0 : index
    %1 = vector.load %arg3[%c0_1, %c0_2] : memref<8x128xf32, #tpu.memory_space<vmem>>, vector<8x128xf32>
    %c0_3 = arith.constant 0 : index
    %c0_4 = arith.constant 0 : index
    %2 = vector.load %arg4[%c0_3, %c0_4] : memref<8x128xf32, #tpu.memory_space<vmem>>, vector<8x128xf32>
    %3 = arith.subf %0, %1 : vector<8x128xf32>
    %cst = arith.constant 9.99999997E-7 : f32
    %4 = vector.broadcast %cst : f32 to vector<8x128xf32>
    %5 = arith.addf %3, %4 : vector<8x128xf32>
    %6 = arith.mulf %5, %5 : vector<8x128xf32>
    %cst_5 = arith.constant dense<0.000000e+00> : vector<8xf32>
    %7 = vector.multi_reduction <add>, %6, %cst_5 [1] : vector<8x128xf32> to vector<8xf32>
    %8 = vector.shape_cast %7 : vector<8xf32> to vector<8x1xf32>
    %9 = arith.subf %0, %2 : vector<8x128xf32>
    %cst_6 = arith.constant 9.99999997E-7 : f32
    %10 = vector.broadcast %cst_6 : f32 to vector<8x128xf32>
    %11 = arith.addf %9, %10 : vector<8x128xf32>
    %12 = arith.mulf %11, %11 : vector<8x128xf32>
    %cst_7 = arith.constant dense<0.000000e+00> : vector<8xf32>
    %13 = vector.multi_reduction <add>, %12, %cst_7 [1] : vector<8x128xf32> to vector<8xf32>
    %14 = vector.shape_cast %13 : vector<8xf32> to vector<8x1xf32>
    %15 = math.sqrt %8 : vector<8x1xf32>
    %16 = math.sqrt %14 : vector<8x1xf32>
    %17 = arith.subf %15, %16 : vector<8x1xf32>
    %cst_8 = arith.constant 5.000000e-01 : f32
    %18 = vector.broadcast %cst_8 : f32 to vector<8x1xf32>
    %19 = arith.addf %17, %18 : vector<8x1xf32>
    %cst_9 = arith.constant 0.000000e+00 : f32
    %20 = vector.broadcast %cst_9 : f32 to vector<8x1xf32>
    %21 = arith.maximumf %19, %20 : vector<8x1xf32>
    %22 = tpu.iota {dimensions = array<i32: 0>} : vector<8x1xi32>
    %c8_i32 = arith.constant 8 : i32
    %23 = arith.muli %arg0, %c8_i32 : i32
    %24 = vector.broadcast %23 : i32 to vector<8x1xi32>
    %25 = arith.addi %22, %24 : vector<8x1xi32>
    %c0_10 = arith.constant 0 : index
    %26 = memref.load %arg1[%c0_10] : memref<1xi32, #tpu.memory_space<smem>>
    %27 = vector.broadcast %26 : i32 to vector<8x1xi32>
    %28 = arith.cmpi slt, %25, %27 : vector<8x1xi32>
    %cst_11 = arith.constant 0.000000e+00 : f32
    %29 = vector.broadcast %cst_11 : f32 to vector<8x1xf32>
    %30 = arith.select %28, %21, %29 : vector<8x1xi1>, vector<8x1xf32>
    %cst_12 = arith.constant dense<0.000000e+00> : vector<1xf32>
    %31 = vector.multi_reduction <add>, %30, %cst_12 [0] : vector<8x1xf32> to vector<1xf32>
    %32 = vector.shape_cast %31 : vector<1xf32> to vector<1x1xf32>
    %c0_13 = arith.constant 0 : index
    %c0_14 = arith.constant 0 : index
    %33 = vector.load %arg5[%c0_13, %c0_14] : memref<1x1xf32, #tpu.memory_space<vmem>>, vector<1x1xf32>
    tpu.vector_store %arg5[%c0_13, %c0_14], %32 {strides = array<i32>} : memref<1x1xf32, #tpu.memory_space<vmem>>, vector<1x1xf32>,
    return
  }
  func.func @transform_0(%arg0: i32, %arg1: memref<1xi32, #tpu.memory_space<smem>>) -> (i32, i32) {
    %c0_i32 = arith.constant 0 : i32
    %c0_i32_0 = arith.constant 0 : i32
    return %arg0, %c0_i32 : i32, i32
  }
  func.func @transform_1(%arg0: i32, %arg1: memref<1xi32, #tpu.memory_space<smem>>) -> (i32, i32) {
    %c0_i32 = arith.constant 0 : i32
    %c0_i32_0 = arith.constant 0 : i32
    return %arg0, %c0_i32 : i32, i32
  }
  func.func @transform_2(%arg0: i32, %arg1: memref<1xi32, #tpu.memory_space<smem>>) -> (i32, i32) {
    %c0_i32 = arith.constant 0 : i32
    %c0_i32_0 = arith.constant 0 : i32
    return %arg0, %c0_i32 : i32, i32
  }
  func.func @transform_3(%arg0: i32, %arg1: memref<1xi32, #tpu.memory_space<smem>>) -> (i32, i32) {
    %c0_i32 = arith.constant 0 : i32
    %c0_i32_0 = arith.constant 0 : i32
    return %arg0, %c0_i32 : i32, i32
  }
}

</mosaic_0001>

<bundles_post_ra>
// kernel: tpu_custom_call.1
= control target key start
LH: loop header
LB: loop body
LE: loop exit
PB: predicated region body
PF: predicated region fallthrough
CT: control target
= control target key end

     0   :  { %10 = vsyncpa [#allocation5], 0  ;;  %s253_s0 = inlined_call_operand.<no memory space> [shape: s32[1], index: 0, kind: input, shape index: {}]   ;;  %s254_s1 = inlined_call_operand.hbm [shape: f32[8,128], index: 1, kind: input, shape index: {}]   ;;  %s255_s2 = inlined_call_operand.hbm [shape: f32[8,128], index: 2, kind: input, shape index: {}]   ;;  %s256_s3 = inlined_call_operand.vmem [shape: f32[8,128], index: 3, kind: input, shape index: {}]   ;;  %s257_s4 = inlined_call_operand.hbm [shape: f32[1,1], index: 4, kind: output, shape index: {}]  }
   0x1   :  { %11 = vsyncpa [#allocation8], 0 }
   0x2   :  { %12 = vsyncpa [#allocation6], 0  ;;  %s183_s15 = smov [#allocation4]   ;;  %s184_s17 = smov [#allocation7]  }
   0x3   :  { %s19_s16 = sshll.u32 %s183_s15, 4  ;;  %s29_s18 = sshll.u32 %s184_s17, 4  ;;  %s20_s16 = int_to_ptr.vmem [resolvable:$true] %s19_s16  ;;  %s30_s18 = int_to_ptr.vmem [resolvable:$true] %s29_s18 }
   0x4   :  { %s111_s21 = scalar_lea.hbm %s254_s1, 128 }
   0x5   :  { %p112_p0 = scmp.ne.s32.totalorder %s254_s1, %s111_s21  ;;  %p115_p1 = scmp.lt.u32.totalorder %s111_s21, %s254_s1 }
   0x7   :  { %p117_p2 = pnand %p115_p1, %p112_p0 }
   0x9   :  { %120 = shalt.err (!%p117_p2)
}
   0xa   :  { %s121_s26 = scalar_lea.vmem %s20_s16, 128  ;;  %p126_p4 = scmp.lt.s32.totalorder %s20_s16, %s20_s16 }
   0xb   :  { %p122_p3 = scmp.ne.s32.totalorder %s20_s16, %s121_s26  ;;  %p127_p5 = scmp.lt.s32.totalorder %s121_s26, %s121_s26 }
   0xd   :  { %p128_p6 = por %p127_p5, %p126_p4 }
   0xf   :  { %p129_p7 = pnand %p128_p6, %p122_p3 }
  0x11   :  { %132 = shalt.err (!%p129_p7)
}
  0x12   :  { %22 = dma.hbm_to_vmem [thread:$0]  %s254_s1, 128, %s20_s16, [#allocation5]  }
  0x13   :  { %s133_s5 = scalar_lea.hbm %s255_s2, 128 }
  0x14   :  { %p134_p8 = scmp.ne.s32.totalorder %s255_s2, %s133_s5  ;;  %p137_p9 = scmp.lt.u32.totalorder %s133_s5, %s255_s2 }
  0x16   :  { %p139_p10 = pnand %p137_p9, %p134_p8 }
  0x18   :  { %142 = shalt.err (!%p139_p10)
}
  0x19   :  { %s143_s10 = scalar_lea.vmem %s30_s18, 128  ;;  %p148_p12 = scmp.lt.s32.totalorder %s30_s18, %s30_s18 }
  0x1a   :  { %p144_p11 = scmp.ne.s32.totalorder %s30_s18, %s143_s10  ;;  %p149_p13 = scmp.lt.s32.totalorder %s143_s10, %s143_s10 }
  0x1c   :  { %p150_p0 = por %p149_p13, %p148_p12 }
  0x1e   :  { %p151_p1 = pnand %p150_p0, %p144_p11 }
  0x20   :  { %154 = shalt.err (!%p151_p1)
}
  0x21   :  { %32 = dma.hbm_to_vmem [thread:$0]  %s255_s2, 128, %s30_s18, [#allocation8]  }
  0x22   :  { %177 = dma.done.wait [#allocation5], 128  }
  0x23   :  { %178 = vsyncadd [#allocation5], 4294967168 }
  0x24   :  { %179 = dma.done.wait [#allocation8], 128  }
  0x25   :  { %180 = vsyncadd [#allocation8], 4294967168  ;;  %v41_v0 = vld [vmem:[#allocation4] sm:$0xff]  ;;  %v42_v1 = vld [vmem:[#allocation7] sm:$0xff]  ;;  %v71_v14 = vlaneseq  ;;  %v77_v24 = vstv %s253_s0  ;;  %s185_s14 = smov [#allocation9]   ;;  %vm86_vm5 = vcmask 0  }
  0x26   :  { %v43_v2 = vld [vmem:[%s256_s3] sm:$0xff]  ;;  %v44_v3 = vsub.f32 %v41_v0, %v42_v1  ;;  %s94_s15 = sshll.u32 %s185_s14, 4  ;;  %s95_s15 = int_to_ptr.vmem [resolvable:$true] %s94_s15 }
  0x27   :  { %v49_v4 = vsub.f32 %v41_v0, %v43_v2  ;;  %v72_v22 = vshrl.u32 %v71_v14, 7  ;;  %s155_s16 = scalar_lea.vmem %s95_s15, 16  ;;  %s159_s17 = scalar_lea.vmem %s95_s15, 32 }
  0x28   :  { %v45_v5 = vadd.f32 1e-06, %v44_v3  ;;  %p156_p2 = scmp.ne.s32.totalorder %s95_s15, %s155_s16  ;;  %p160_p3 = scmp.lt.s32.totalorder %s95_s15, %s95_s15 }
  0x29   :  { %v50_v6 = vadd.f32 1e-06, %v49_v4  ;;  %vm78_vm4 = vcmp.lt.s32.totalorder %v72_v22, %v77_v24  ;;  %p161_p4 = scmp.lt.s32.totalorder %s159_s17, %s155_s16 }
  0x2a   :  { %v46_v7 = vmul.f32 %v45_v5, %v45_v5 }
  0x2b   :  { %v51_v8 = vmul.f32 %v50_v6, %v50_v6  ;;  %p162_p5 = por %p161_p4, %p160_p3 }
  0x2c   :  { %47 = vadd.xlane.f32.xlu0 %v46_v7 }
  0x2d   :  { %p163_p6 = pnand %p162_p5, %p156_p2 }
  0x30   :  { %52 = vadd.xlane.f32.xlu0 %v51_v8 }
  0xb9   :  { %v48_v9 = vpop.xlane.xlu0 %47 }
  0xba   :  { %107 = vrsqrt.f32 %v48_v9  ;;  %vm56_vm0 = vcmp.eq.f32.partialorder %v48_v9, inf  ;;  %v59_v17 = vand.u32 2147483648, %v48_v9  ;;  %vm58_vm2 = vcmp.eq.f32.partialorder %v48_v9, 0.0 }
  0xbd   :  { %v53_v10 = vpop.xlane.xlu0 %52 }
  0xbe   :  { %109 = vrsqrt.f32 %v53_v10  ;;  %vm63_vm1 = vcmp.eq.f32.partialorder %v53_v10, inf  ;;  %v66_v18 = vand.u32 2147483648, %v53_v10  ;;  %vm65_vm3 = vcmp.eq.f32.partialorder %v53_v10, 0.0 }
  0xc4   :  { %v108_v11 = vpop.eup %107 }
  0xc5   :  { %v55_v12 = vmul.f32 %v108_v11, %v48_v9 }
  0xc7   :  { %v57_v15 = vsel %vm56_vm0, %v48_v9, %v55_v12 }
  0xc8   :  { %v110_v13 = vpop.eup %109  ;;  %v60_v20 = vsel %vm58_vm2, %v59_v17, %v57_v15 }
  0xc9   :  { %v62_v16 = vmul.f32 %v110_v13, %v53_v10 }
  0xcb   :  { %v64_v19 = vsel %vm63_vm1, %v53_v10, %v62_v16 }
  0xcc   :  { %v67_v21 = vsel %vm65_vm3, %v66_v18, %v64_v19 }
  0xcd   :  { %v68_v23 = vsub.f32 %v60_v20, %v67_v21 }
  0xcf   :  { %v69_v25 = vadd.f32 0.5, %v68_v23 }
  0xd1   :  { %v70_v26 = vmax.f32 %v69_v25, 0.0 }
  0xd3   :  { %v79_v27 = vsel %vm78_vm4, %v70_v26, 0.0 }
  0xd4   :  { %v80_v28 = vrot.slane %v79_v27, 4 }
  0xd6   :  { %v81_v29 = vadd.f32 %v80_v28, %v79_v27 }
  0xd8   :  { %v82_v30 = vrot.slane %v81_v29, 2 }
  0xda   :  { %v83_v31 = vadd.f32 %v82_v30, %v81_v29 }
  0xdc   :  { %v84_v32 = vrot.slane %v83_v31, 1 }
  0xde   :  { %v85_v33 = vadd.f32 %v84_v32, %v83_v31 }
  0xe0   :  { %87 = vst.msk [vmem:[#allocation9] sm:$0x1] %vm86_vm5, %v85_v33 }
  0xe1   :  { %166 = shalt.err (!%p163_p6)
}
  0xe2   :  { %s167_s19 = scalar_lea.hbm %s257_s4, 16 }
  0xe3   :  { %p168_p7 = scmp.ne.s32.totalorder %s257_s4, %s167_s19  ;;  %p171_p8 = scmp.lt.u32.totalorder %s167_s19, %s257_s4 }
  0xe5   :  { %p173_p9 = pnand %p171_p8, %p168_p7 }
  0xe7   :  { %176 = shalt.err (!%p173_p9)
}
  0xe8   :  { %97 = dma.vmem_to_hbm [thread:$0]  %s95_s15, 16, %s257_s4, [#allocation6]  }
  0xe9   :  { %181 = dma.done.wait [#allocation6], 16  }
  0xea   :  { %182 = vsyncadd [#allocation6], 4294967280 }
  0xeb   :  { %101 = vsyncpa [#allocation5], 1 }
  0xec   :  { %102 = vsyncpa [#allocation8], 1 }
  0xed   :  { %103 = vsyncpa [#allocation6], 1 }

</bundles_post_ra>
